<compile_context>
chip_gen: v7x
topology: tpu7x:2x2x1
jax: 0.10.0
libtpu: 0.0.40
codegen_flags: <defaults>
</compile_context>

<pallas_src>
import functools
import math

import jax
import jax.numpy as jnp
from jax.experimental import pallas as pl
from jax.experimental.pallas import tpu as pltpu


# ---------------------------------------------------------------------------
# Fused kernel: Bb batch elements per grid step
# ---------------------------------------------------------------------------

def _sha_kernel(*refs, normalize, use_mask, eps):
    """Ref layout (inputs then output):
       q, k, v, w_qkv, b_qkv,
       [ln_gamma, ln_beta]   (iff normalize; stacked (3, L, Dout))
       [mask_bias]           (iff use_mask;  additive bf16 bias)
       out
    """
    q_ref, k_ref, v_ref, w_ref, b_ref = refs[:5]
    idx = 5
    if normalize:
        g_ref, beta_ref = refs[idx], refs[idx + 1]
        idx += 2
    if use_mask:
        bias_ref = refs[idx]
        idx += 1
    o_ref = refs[idx]

    Bb, Lq, Din = q_ref.shape
    Lk = k_ref.shape[1]
    Dout = o_ref.shape[-1]
    rq, rk = Bb * Lq, Bb * Lk

    # --- fused q/k/v projection: one MXU matmul for all three ---------------
    x_all = jnp.concatenate(
        [q_ref[...].reshape(rq, Din),
         k_ref[...].reshape(rk, Din),
         v_ref[...].reshape(rk, Din)], axis=0)                    # (rq+2rk, Din) bf16
    proj = jnp.dot(x_all, w_ref[...], preferred_element_type=jnp.float32)

    Q = (proj[:rq, :Dout] + b_ref[:, :Dout]).reshape(Bb, Lq, Dout)
    K = (proj[rq:rq + rk, Dout:2 * Dout]
         + b_ref[:, Dout:2 * Dout]).reshape(Bb, Lk, Dout)
    V = (proj[rq + rk:, 2 * Dout:]
         + b_ref[:, 2 * Dout:]).reshape(Bb, Lk, Dout)

    if normalize:
        # nn.LayerNorm((seq_len, out_embed_dim)): mean/var over BOTH trailing
        # dims per batch element.  1/sqrt(Dout) is pre-folded into g_ref[0] /
        # beta_ref[0] (the q affine) by the wrapper.
        def _ln(x, g, b):
            mu = jnp.mean(x, axis=(1, 2), keepdims=True)
            xc = x - mu
            var = jnp.mean(xc * xc, axis=(1, 2), keepdims=True)
            return xc * jax.lax.rsqrt(var + eps) * g + b

        Q = _ln(Q, g_ref[0], beta_ref[0])
        K = _ln(K, g_ref[1], beta_ref[1])
        V = _ln(V, g_ref[2], beta_ref[2])

    # --- scores = Q @ K^T (batched over Bb; scale already folded into Q) ----
    s = jax.lax.dot_general(Q, K, (((2,), (2,)), ((0,), (0,))),
                            preferred_element_type=jnp.float32)    # (Bb, Lq, Lk)
    if use_mask:
        s = s + bias_ref[...].astype(jnp.float32)                  # additive bias

    # numerically-stable softmax; divide goes to the EUP reciprocal slot
    m = jnp.max(s, axis=-1, keepdims=True)
    p = jnp.exp(s - m)
    denom = jnp.sum(p, axis=-1, keepdims=True)
    p = p * pl.reciprocal(denom, approx=True)

    out = jax.lax.dot_general(p, V, (((2,), (1,)), ((0,), (0,))),
                              preferred_element_type=jnp.float32)   # (Bb, Lq, Dout)
    o_ref[...] = out.astype(o_ref.dtype)


# ---------------------------------------------------------------------------
# Wrapper (single pallas_call for the whole forward)
# ---------------------------------------------------------------------------

def _default_num_steps(batch):
    # v7x has 2 TensorCores/chip -> keep 2 "parallel" grid steps so both TCs
    # get work; v5e/v6e have 1 TC -> a single fat step minimizes per-step
    # pipeline overhead.
    try:
        kind = jax.devices()[0].device_kind.lower()
        two_tc = ("v7" in kind) or ("7x" in kind)
    except Exception:
        two_tc = False
    if two_tc and batch % 2 == 0 and batch >= 2:
        return 2
    return 1


def single_head_attention(params, Q, K, V, mask=None, *, normalize=False,
                          eps=1e-5, compute_dtype=jnp.bfloat16,
                          out_dtype=jnp.bfloat16, num_steps=None):
    """Matches SingleHeadAttention.forward(Q, K, V, mask).

    Q: (B, Lq, Din); K, V: (B, Lk, Din); mask (optional): (B, Lq, Lk), entries
    == 0 masked out.  Weights stored as (Din, Dout) (transposed vs
    nn.Linear.weight).
    """
    B, Lq, Din = Q.shape
    Lk = K.shape[1]
    Dout = params["wq"].shape[1]
    inv_sqrt_d = 1.0 / math.sqrt(Dout)

    if num_steps is None:
        num_steps = _default_num_steps(B)
    assert B % num_steps == 0, "batch must be divisible by the grid step count"
    Bb = B // num_steps

    f32, cd = jnp.float32, compute_dtype

    # Fold 1/sqrt(Dout) exactly once, at trace time.
    if normalize:
        wq_eff, bq_eff = params["wq"], params["bq"]
        ln_g = jnp.stack([params["q_g"] * inv_sqrt_d,
                          params["k_g"], params["v_g"]]).astype(f32)
        ln_b = jnp.stack([params["q_b"] * inv_sqrt_d,
                          params["k_b"], params["v_b"]]).astype(f32)
    else:
        wq_eff = params["wq"] * inv_sqrt_d
        bq_eff = params["bq"] * inv_sqrt_d

    # Fused projection weight / bias.
    w_qkv = jnp.concatenate([wq_eff, params["wk"], params["wv"]],
                            axis=1).astype(cd)                       # (Din, 3*Dout)
    b_qkv = jnp.concatenate([bq_eff, params["bk"], params["bv"]]
                            ).reshape(1, 3 * Dout).astype(f32)       # (1, 3*Dout)

    inputs = [Q.astype(cd), K.astype(cd), V.astype(cd), w_qkv, b_qkv]
    in_specs = [
        pl.BlockSpec((Bb, Lq, Din), lambda b: (b, 0, 0)),
        pl.BlockSpec((Bb, Lk, Din), lambda b: (b, 0, 0)),
        pl.BlockSpec((Bb, Lk, Din), lambda b: (b, 0, 0)),
        pl.BlockSpec((Din, 3 * Dout), lambda b: (0, 0)),
        pl.BlockSpec((1, 3 * Dout), lambda b: (0, 0)),
    ]
    if normalize:
        inputs += [ln_g, ln_b]
        in_specs += [pl.BlockSpec((3, Lq, Dout), lambda b: (0, 0, 0)),
                     pl.BlockSpec((3, Lq, Dout), lambda b: (0, 0, 0))]
    use_mask = mask is not None
    if use_mask:
        # Additive bias instead of in-kernel compare+select; bf16 halves traffic.
        mask_bias = jnp.where(mask == 0, -1e9, 0.0).astype(jnp.bfloat16)
        inputs.append(mask_bias)
        in_specs.append(pl.BlockSpec((Bb, Lq, Lk), lambda b: (b, 0, 0)))

    kernel = functools.partial(_sha_kernel, normalize=normalize,
                               use_mask=use_mask, eps=eps)

    # Advisory cost estimate so XLA can schedule/overlap this tiny call.
    rows = B * (Lq + 2 * Lk)
    flops = 2 * rows * Din * (3 * Dout) + 2 * 2 * B * Lq * Lk * Dout
    bytes_accessed = int(sum(x.size * x.dtype.itemsize for x in inputs)
                         + B * Lq * Dout * jnp.dtype(out_dtype).itemsize)
    cost = pl.CostEstimate(flops=int(flops), transcendentals=int(B * Lq * Lk),
                           bytes_accessed=bytes_accessed)

    return pl.pallas_call(
        kernel,
        out_shape=jax.ShapeDtypeStruct((B, Lq, Dout), out_dtype),
        grid=(num_steps,),
        in_specs=in_specs,
        out_specs=pl.BlockSpec((Bb, Lq, Dout), lambda b: (b, 0, 0)),
        compiler_params=pltpu.CompilerParams(dimension_semantics=("parallel",)),
        cost_estimate=cost,
    )(*inputs)


# ---------------------------------------------------------------------------
# Pure-JAX reference (PyTorch semantics, f32 end to end)
# ---------------------------------------------------------------------------

def single_head_attention_ref(params, Q, K, V, mask=None, *, normalize=False, eps=1e-5):
    q = Q @ params["wq"] + params["bq"]
    k = K @ params["wk"] + params["bk"]
    v = V @ params["wv"] + params["bv"]
    if normalize:
        def _ln(x, g, b):
            mu = jnp.mean(x, axis=(-2, -1), keepdims=True)
            var = jnp.mean((x - mu) ** 2, axis=(-2, -1), keepdims=True)
            return (x - mu) * jax.lax.rsqrt(var + eps) * g + b
        q = _ln(q, params["q_g"], params["q_b"])
        k = _ln(k, params["k_g"], params["k_b"])
        v = _ln(v, params["v_g"], params["v_b"])
    d = params["wq"].shape[1]
    s = jnp.einsum("bqd,bkd->bqk", q, k) / math.sqrt(d)
    if mask is not None:
        s = jnp.where(mask == 0, -1e9, s)
    p = jax.nn.softmax(s, axis=-1)
    return jnp.einsum("bqk,bkd->bqd", p, v)


if __name__ == "__main__":
    # Small shapes consistent with the module; Dout=128 keeps outputs lane-dense,
    # L=16 keeps sublanes aligned, B=4 gives a real batch axis to block.
    B, L, Din, Dout = 4, 16, 32, 128

    key = jax.random.PRNGKey(0)
    ks = jax.random.split(key, 12)

    def w(k, shape, scale=0.1):
        return scale * jax.random.normal(k, shape, dtype=jnp.float32)

    params = dict(
        wq=w(ks[0], (Din, Dout)), bq=w(ks[1], (Dout,), 0.02),
        wk=w(ks[2], (Din, Dout)), bk=w(ks[3], (Dout,), 0.02),
        wv=w(ks[4], (Din, Dout)), bv=w(ks[5], (Dout,), 0.02),
        # LayerNorm((seq_len, out_embed_dim)) affine params
        q_g=1.0 + w(ks[6], (L, Dout), 0.02), q_b=w(ks[7], (L, Dout), 0.02),
        k_g=1.0 + w(ks[8], (L, Dout), 0.02), k_b=w(ks[9], (L, Dout), 0.02),
        v_g=1.0 + w(ks[10], (L, Dout), 0.02), v_b=w(ks[11], (L, Dout), 0.02),
    )
    kq, kk, kv, km = jax.random.split(jax.random.PRNGKey(1), 4)
    Q = jax.random.normal(kq, (B, L, Din), dtype=jnp.float32)
    K = jax.random.normal(kk, (B, L, Din), dtype=jnp.float32)
    V = jax.random.normal(kv, (B, L, Din), dtype=jnp.float32)
    mask = (jax.random.uniform(km, (B, L, L)) > 0.2).astype(jnp.float32)

    fwd = jax.jit(functools.partial(single_head_attention, normalize=False))
    fwd_norm = jax.jit(functools.partial(single_head_attention, normalize=True))

    out_plain = fwd(params, Q, K, V)                   # normalize=False, no mask
    out_norm = fwd_norm(params, Q, K, V, mask=mask)    # normalize=True + mask
    jax.block_until_ready((out_plain, out_norm))

    ref_plain = single_head_attention_ref(params, Q, K, V, normalize=False)
    ref_norm = single_head_attention_ref(params, Q, K, V, mask=mask, normalize=True)

    assert out_plain.shape == (B, L, Dout) and out_norm.shape == (B, L, Dout)
    assert bool(jnp.all(jnp.isfinite(out_plain.astype(jnp.float32))))
    assert bool(jnp.all(jnp.isfinite(out_norm.astype(jnp.float32))))
    err_plain = float(jnp.max(jnp.abs(out_plain.astype(jnp.float32) - ref_plain)))
    err_norm = float(jnp.max(jnp.abs(out_norm.astype(jnp.float32) - ref_norm)))
    # bf16 MXU operands + bf16 output + approx reciprocal vs f32 reference:
    # loose-but-meaningful bound.
    assert err_plain < 1e-1, f"normalize=False max abs err {err_plain}"
    assert err_norm < 1e-1, f"normalize=True+mask max abs err {err_norm}"
    print("KERNEL_OK")
</pallas_src>

<mosaic_0001>
module attributes {stable_mosaic.version = 11 : i64} {
  func.func @_sha_kernel(%arg0: i32, %arg1: memref<4x16x32xbf16, #tpu.memory_space<vmem>>, %arg2: memref<4x16x32xbf16, #tpu.memory_space<vmem>>, %arg3: memref<4x16x32xbf16, #tpu.memory_space<vmem>>, %arg4: memref<32x384xbf16, #tpu.memory_space<vmem>>, %arg5: memref<1x384xf32, #tpu.memory_space<vmem>>, %arg6: memref<4x16x128xbf16, #tpu.memory_space<vmem>>) attributes {dimension_semantics = [#tpu.dimension_semantics<parallel>], iteration_bounds = array<i64: 1>, scalar_prefetch = 0 : i64, scratch_operands = 0 : i64, tpu.core_type = #tpu.core_type<tc>, window_params = [{transform_indices = @transform_0, window_bounds = array<i64: 4, 16, 32>}, {transform_indices = @transform_1, window_bounds = array<i64: 4, 16, 32>}, {transform_indices = @transform_2, window_bounds = array<i64: 4, 16, 32>}, {pipeline_mode = #tpu.pipeline_mode<synchronous>, transform_indices = @transform_3, window_bounds = array<i64: 32, 384>}, {pipeline_mode = #tpu.pipeline_mode<synchronous>, transform_indices = @transform_4, window_bounds = array<i64: 1, 384>}, {transform_indices = @transform_5, window_bounds = array<i64: 4, 16, 128>}]} {
    %c0 = arith.constant 0 : index
    %c0_0 = arith.constant 0 : index
    %c0_1 = arith.constant 0 : index
    %0 = vector.load %arg1[%c0, %c0_0, %c0_1] : memref<4x16x32xbf16, #tpu.memory_space<vmem>>, vector<4x16x32xbf16>
    %1 = vector.shape_cast %0 : vector<4x16x32xbf16> to vector<64x32xbf16>
    %c0_2 = arith.constant 0 : index
    %c0_3 = arith.constant 0 : index
    %c0_4 = arith.constant 0 : index
    %2 = vector.load %arg2[%c0_2, %c0_3, %c0_4] : memref<4x16x32xbf16, #tpu.memory_space<vmem>>, vector<4x16x32xbf16>
    %3 = vector.shape_cast %2 : vector<4x16x32xbf16> to vector<64x32xbf16>
    %c0_5 = arith.constant 0 : index
    %c0_6 = arith.constant 0 : index
    %c0_7 = arith.constant 0 : index
    %4 = vector.load %arg3[%c0_5, %c0_6, %c0_7] : memref<4x16x32xbf16, #tpu.memory_space<vmem>>, vector<4x16x32xbf16>
    %5 = vector.shape_cast %4 : vector<4x16x32xbf16> to vector<64x32xbf16>
    %6 = tpu.concatenate %1, %3, %5 in 0 : vector<64x32xbf16>, vector<64x32xbf16>, vector<64x32xbf16> -> vector<192x32xbf16>
    %c0_8 = arith.constant 0 : index
    %c0_9 = arith.constant 0 : index
    %7 = vector.load %arg4[%c0_8, %c0_9] : memref<32x384xbf16, #tpu.memory_space<vmem>>, vector<32x384xbf16>
    %cst = arith.constant dense<0.000000e+00> : vector<192x384xf32>
    %8 = tpu.matmul %6, %7, %cst {dimension_numbers = #tpu.dot_dimension_numbers<[1], [0], [0], [1], [0, 0, 1, 1], [], []>} : vector<192x32xbf16>, vector<32x384xbf16>, vector<192x384xf32> -> vector<192x384xf32>
    %9 = vector.extract_strided_slice %8 {offsets = [0, 0], sizes = [64, 128], strides = [1, 1]} : vector<192x384xf32> to vector<64x128xf32>
    %c0_10 = arith.constant 0 : index
    %c0_11 = arith.constant 0 : index
    %10 = vector.load %arg5[%c0_10, %c0_11] : memref<1x384xf32, #tpu.memory_space<vmem>>, vector<1x128xf32>
    %11 = vector.broadcast %10 : vector<1x128xf32> to vector<64x128xf32>
    %12 = arith.addf %9, %11 : vector<64x128xf32>
    %13 = vector.shape_cast %12 : vector<64x128xf32> to vector<4x16x128xf32>
    %14 = vector.extract_strided_slice %8 {offsets = [64, 128], sizes = [64, 128], strides = [1, 1]} : vector<192x384xf32> to vector<64x128xf32>
    %c0_12 = arith.constant 0 : index
    %c128 = arith.constant 128 : index
    %15 = vector.load %arg5[%c0_12, %c128] : memref<1x384xf32, #tpu.memory_space<vmem>>, vector<1x128xf32>
    %16 = vector.broadcast %15 : vector<1x128xf32> to vector<64x128xf32>
    %17 = arith.addf %14, %16 : vector<64x128xf32>
    %18 = vector.shape_cast %17 : vector<64x128xf32> to vector<4x16x128xf32>
    %19 = vector.extract_strided_slice %8 {offsets = [128, 256], sizes = [64, 128], strides = [1, 1]} : vector<192x384xf32> to vector<64x128xf32>
    %c0_13 = arith.constant 0 : index
    %c256 = arith.constant 256 : index
    %20 = vector.load %arg5[%c0_13, %c256] : memref<1x384xf32, #tpu.memory_space<vmem>>, vector<1x128xf32>
    %21 = vector.broadcast %20 : vector<1x128xf32> to vector<64x128xf32>
    %22 = arith.addf %19, %21 : vector<64x128xf32>
    %23 = vector.shape_cast %22 : vector<64x128xf32> to vector<4x16x128xf32>
    %cst_14 = arith.constant dense<0.000000e+00> : vector<4x16x16xf32>
    %24 = tpu.matmul %13, %18, %cst_14 {dimension_numbers = #tpu.dot_dimension_numbers<[2], [2], [1], [1], [0, 0, 0, 1, 1, 1], [0], [0]>} : vector<4x16x128xf32>, vector<4x16x128xf32>, vector<4x16x16xf32> -> vector<4x16x16xf32>
    %cst_15 = arith.constant dense<0xFF800000> : vector<4x16xf32>
    %25 = vector.multi_reduction <maximumf>, %24, %cst_15 [2] : vector<4x16x16xf32> to vector<4x16xf32>
    %26 = vector.shape_cast %25 : vector<4x16xf32> to vector<4x16x1xf32>
    %27 = vector.broadcast %26 : vector<4x16x1xf32> to vector<4x16x16xf32>
    %28 = arith.subf %24, %27 : vector<4x16x16xf32>
    %29 = math.exp %28 : vector<4x16x16xf32>
    %cst_16 = arith.constant dense<0.000000e+00> : vector<4x16xf32>
    %30 = vector.multi_reduction <add>, %29, %cst_16 [2] : vector<4x16x16xf32> to vector<4x16xf32>
    %31 = vector.shape_cast %30 : vector<4x16xf32> to vector<4x16x1xf32>
    %32 = tpu.reciprocal %31 {approx = true} : vector<4x16x1xf32> -> vector<4x16x1xf32>
    %33 = vector.broadcast %32 : vector<4x16x1xf32> to vector<4x16x16xf32>
    %34 = arith.mulf %29, %33 : vector<4x16x16xf32>
    %cst_17 = arith.constant dense<0.000000e+00> : vector<4x16x128xf32>
    %35 = tpu.matmul %34, %23, %cst_17 {dimension_numbers = #tpu.dot_dimension_numbers<[2], [1], [1], [2], [0, 0, 0, 1, 1, 2], [0], [0]>} : vector<4x16x16xf32>, vector<4x16x128xf32>, vector<4x16x128xf32> -> vector<4x16x128xf32>
    %36 = arith.truncf %35 : vector<4x16x128xf32> to vector<4x16x128xbf16>
    %c0_18 = arith.constant 0 : index
    %c0_19 = arith.constant 0 : index
    %c0_20 = arith.constant 0 : index
    %37 = vector.load %arg6[%c0_18, %c0_19, %c0_20] : memref<4x16x128xbf16, #tpu.memory_space<vmem>>, vector<4x16x128xbf16>
    tpu.vector_store %arg6[%c0_18, %c0_19, %c0_20], %36 {strides = array<i32>} : memref<4x16x128xbf16, #tpu.memory_space<vmem>>, vector<4x16x128xbf16>,
    return
  }
  func.func @transform_0(%arg0: i32) -> (i32, i32, i32) {
    %c0_i32 = arith.constant 0 : i32
    %c0_i32_0 = arith.constant 0 : i32
    %c0_i32_1 = arith.constant 0 : i32
    return %arg0, %c0_i32, %c0_i32_0 : i32, i32, i32
  }
  func.func @transform_1(%arg0: i32) -> (i32, i32, i32) {
    %c0_i32 = arith.constant 0 : i32
    %c0_i32_0 = arith.constant 0 : i32
    %c0_i32_1 = arith.constant 0 : i32
    return %arg0, %c0_i32, %c0_i32_0 : i32, i32, i32
  }
  func.func @transform_2(%arg0: i32) -> (i32, i32, i32) {
    %c0_i32 = arith.constant 0 : i32
    %c0_i32_0 = arith.constant 0 : i32
    %c0_i32_1 = arith.constant 0 : i32
    return %arg0, %c0_i32, %c0_i32_0 : i32, i32, i32
  }
  func.func @transform_3(%arg0: i32) -> (i32, i32) {
    %c0_i32 = arith.constant 0 : i32
    %c0_i32_0 = arith.constant 0 : i32
    %c0_i32_1 = arith.constant 0 : i32
    return %c0_i32, %c0_i32_0 : i32, i32
  }
  func.func @transform_4(%arg0: i32) -> (i32, i32) {
    %c0_i32 = arith.constant 0 : i32
    %c0_i32_0 = arith.constant 0 : i32
    %c0_i32_1 = arith.constant 0 : i32
    return %c0_i32, %c0_i32_0 : i32, i32
  }
  func.func @transform_5(%arg0: i32) -> (i32, i32, i32) {
    %c0_i32 = arith.constant 0 : i32
    %c0_i32_0 = arith.constant 0 : i32
    %c0_i32_1 = arith.constant 0 : i32
    return %arg0, %c0_i32, %c0_i32_0 : i32, i32, i32
  }
}

</mosaic_0001>

<bundles_post_ra>
// kernel: single_head_attention.1
= control target key start
LH: loop header
LB: loop body
LE: loop exit
PB: predicated region body
PF: predicated region fallthrough
CT: control target
= control target key end

     0   :  { %v1565_v2 = vmov 0   ;;  %vm146_vm0 = vcmask 261120   ;;  %s1769_s0 = inlined_call_operand.vmem [shape: bf16[4,16,32], index: 0, kind: input, shape index: {}]   ;;  %s1770_s1 = inlined_call_operand.vmem [shape: bf16[4,16,32], index: 1, kind: input, shape index: {}]   ;;  %s1771_s2 = inlined_call_operand.vmem [shape: bf16[4,16,32], index: 2, kind: input, shape index: {}]   ;;  %s1772_s3 = inlined_call_operand.vmem [shape: bf16[32,384], index: 3, kind: input, shape index: {}]   ;;  %s1773_s4 = inlined_call_operand.vmem [shape: f32[1,384], index: 4, kind: input, shape index: {}]   ;;  %s1774_s5 = inlined_call_operand.hbm [shape: bf16[4,16,128], index: 5, kind: output, shape index: {}]  }
   0x1   :  { %v1489_v0 = vld [vmem:[%s1772_s3 + $0x4] ss:$12 sps:$4 sm:$0xff]   ;;  %v1491_v1 = vld [vmem:[%s1772_s3] ss:$12 sps:$4 sm:$0xff]   ;;  %215 = vmatprep.mubr.bf16.mxu0 %v1565_v2  ;;  %v1492_v3 = vld [vmem:[%s1772_s3 + $0x1c] ss:$12 sps:$4 sm:$0xff]  }
   0x2   :  { %183 = vmatprep.subr.bf16.mxu0 %v1489_v0  ;;  %v1494_v4 = vld [vmem:[%s1772_s3 + $0x18] ss:$12 sps:$4 sm:$0xff]   ;;  %v1503_v6 = vld [vmem:[%s1772_s3 + $0x8] ss:$12 sps:$4 sm:$0xff]   ;;  %v1504_v7 = vld [vmem:[%s1772_s3 + $0x20] ss:$12 sps:$4 sm:$0xff]  }
   0x3   :  { %184 = vmatpush1.bf16.msra.mxu0 %v1491_v1  ;;  %v1495_v5 = vld [vmem:[%s1769_s0] sm:$0xff]   ;;  %1369 = vmatprep.subr.bf16.mxu1 %v1503_v6  ;;  %v1496_v8 = vld [vmem:[%s1769_s0 + $0x8] sm:$0xff]  }
   0x4   :  { %185 = vmatprep.subr.bf16.mxu0 %v1492_v3  ;;  %1373 = vmatprep.mubr.msk.bf16.mxu1 %vm146_vm0, %v1495_v5 }
   0x5   :  { %1370 = vmatpush3.bf16.msra.mxu1 %v1503_v6 }
   0x6   :  { %1371 = vmatprep.subr.bf16.mxu1 %v1504_v7 }
   0x7   :  { %186 = vmatpush1.bf16.msra.mxu0 %v1494_v4 }
   0xa   :  { %1249 = vmatmul.mubr.msk.bf16.vlgmr.msra.gmra.mrb[0].mxu0 %vm146_vm0, %v1495_v5 }
   0xb   :  { %223 = vmatprep.mubr.bf16.mxu0 %v1565_v2 }
   0xc   :  { %10 = vsyncpa [#allocation3], 0  ;;  %1372 = vmatpush3.bf16.msra.mxu1 %v1504_v7  ;;  %v1497_v9 = vld [vmem:[%s1769_s0 + $0x10] sm:$0xff]   ;;  %v1498_v10 = vld [vmem:[%s1769_s0 + $0x18] sm:$0xff]   ;;  %vm762_vm1 = vcmask 130048  }
   0xd   :  { %v1499_v11 = vld [vmem:[%s1770_s1] sm:$0xff]   ;;  %v1500_v12 = vld [vmem:[%s1770_s1 + $0x8] sm:$0xff]   ;;  %v1501_v13 = vld [vmem:[%s1770_s1 + $0x10] sm:$0xff]  }
   0xe   :  { %v1505_v14 = vld [vmem:[%s1771_s2] sm:$0xff]   ;;  %v1502_v15 = vld [vmem:[%s1770_s1 + $0x18] sm:$0xff]   ;;  %v1506_v16 = vld [vmem:[%s1771_s2 + $0x8] sm:$0xff]  }
   0xf   :  { %1374 = vmatmul.mubr.msk.bf16.vlgmr.msra.gmra.mrb[0].mxu1 %vm146_vm0, %v1496_v8  ;;  %v1507_v17 = vld [vmem:[%s1771_s2 + $0x10] sm:$0xff]   ;;  %v1508_v18 = vld [vmem:[%s1771_s2 + $0x18] sm:$0xff]   ;;  %v1680_v19 = vld [vmem:[%s1773_s4] ss:$0 sm:$0xff] }
  0x10   :  { %1377 = vmatprep.mubr.msk.bf16.mxu1 %vm146_vm0, %v1497_v9  ;;  %v1274_v52 = vld [vmem:[%s1773_s4 + $0x1] ss:$0 sm:$0xff]  ;;  %v1700_v1 = vld [vmem:[%s1773_s4 + $0x2] ss:$0 sm:$0xff]  ;;  %s1566_s4 = smov [#allocation2]  }
  0x11   :  { %s1220_s6 = sshll.u32 %s1566_s4, 4  ;;  %s1221_s6 = int_to_ptr.vmem [resolvable:$true] %s1220_s6 }
  0x12   :  { %1250 = vmatmul.mubr.msk.bf16.gmra.mrb[4].mxu0 %vm146_vm0, %v1496_v8  ;;  %s1541_s7 = scalar_lea.vmem %s1221_s6, 512  ;;  %p1546_p1 = scmp.lt.s32.totalorder %s1221_s6, %s1221_s6 }
  0x13   :  { %231 = vmatprep.mubr.bf16.mxu0 %v1565_v2  ;;  %p1542_p0 = scmp.ne.s32.totalorder %s1221_s6, %s1541_s7  ;;  %p1547_p2 = scmp.lt.s32.totalorder %s1541_s7, %s1541_s7 }
  0x15   :  { %p1548_p3 = por %p1547_p2, %p1546_p1 }
  0x17   :  { %1378 = vmatmul.mubr.msk.bf16.gmra.mrb[4].mxu1 %vm146_vm0, %v1498_v10  ;;  %p1549_p4 = pnand %p1548_p3, %p1542_p0 }
  0x18   :  { %1381 = vmatprep.mubr.msk.bf16.mxu1 %vm146_vm0, %v1499_v11 }
  0x1a   :  { %1251 = vmatmul.mubr.msk.bf16.gmra.mrb[8].mxu0 %vm146_vm0, %v1497_v9 }
  0x1b   :  { %239 = vmatprep.mubr.bf16.mxu0 %v1565_v2 }
  0x1f   :  { %1382 = vmatmul.mubr.msk.bf16.gmra.mrb[8].mxu1 %vm146_vm0, %v1500_v12 }
  0x20   :  { %1385 = vmatprep.mubr.msk.bf16.mxu1 %vm146_vm0, %v1501_v13 }
  0x22   :  { %1252 = vmatmul.mubr.msk.bf16.gmra.mrb[12].mxu0 %vm146_vm0, %v1498_v10 }
  0x23   :  { %247 = vmatprep.mubr.bf16.mxu0 %v1565_v2 }
  0x27   :  { %1386 = vmatmul.mubr.msk.bf16.gmra.mrb[12].mxu1 %vm146_vm0, %v1502_v15 }
  0x28   :  { %1389 = vmatprep.mubr.msk.bf16.mxu1 %vm146_vm0, %v1505_v14 }
  0x2a   :  { %1253 = vmatmul.mubr.msk.bf16.gmra.mrb[16].mxu0 %vm146_vm0, %v1499_v11 }
  0x2b   :  { %255 = vmatprep.mubr.bf16.mxu0 %v1565_v2 }
  0x2f   :  { %1390 = vmatmul.mubr.msk.bf16.gmra.mrb[16].mxu1 %vm146_vm0, %v1506_v16 }
  0x30   :  { %1393 = vmatprep.mubr.msk.bf16.mxu1 %vm146_vm0, %v1507_v17 }
  0x32   :  { %1254 = vmatmul.mubr.msk.bf16.gmra.mrb[20].mxu0 %vm146_vm0, %v1500_v12 }
  0x33   :  { %263 = vmatprep.mubr.bf16.mxu0 %v1565_v2 }
  0x37   :  { %1394 = vmatmul.mubr.msk.bf16.gmra.mrb[20].mxu1 %vm146_vm0, %v1508_v18 }
  0x3a   :  { %1255 = vmatmul.mubr.msk.bf16.gmra.mrb[24].mxu0 %vm146_vm0, %v1501_v13 }
  0x3b   :  { %271 = vmatprep.mubr.bf16.mxu0 %v1565_v2 }
  0x42   :  { %1256 = vmatmul.mubr.msk.bf16.gmra.mrb[28].mxu0 %vm146_vm0, %v1502_v15 }
  0x43   :  { %279 = vmatprep.mubr.bf16.mxu0 %v1565_v2 }
  0x4a   :  { %1257 = vmatmul.mubr.msk.bf16.gmra.mrb[32].mxu0 %vm146_vm0, %v1505_v14 }
  0x4b   :  { %285 = vmatprep.mubr.bf16.mxu0 %v1565_v2 }
  0x52   :  { %1258 = vmatmul.mubr.msk.bf16.gmra.mrb[36].mxu0 %vm146_vm0, %v1506_v16 }
  0x53   :  { %291 = vmatprep.mubr.bf16.mxu0 %v1565_v2 }
  0x5a   :  { %1259 = vmatmul.mubr.msk.bf16.gmra.mrb[40].mxu0 %vm146_vm0, %v1507_v17 }
  0x5b   :  { %297 = vmatprep.mubr.bf16.mxu0 %v1565_v2 }
  0x62   :  { %1260 = vmatmul.mubr.msk.bf16.gmra.mrb[44].mxu0 %vm146_vm0, %v1508_v18 }
  0xdd   :  { %v217_v20 = vpop.f32.mrb[0].mxu0 }
  0xde   :  { %v424_v21 = vadd.f32 %v1680_v19, %v217_v20  ;;  %v219_v22 = vpop.f32.mrb[1].mxu0 }
  0xdf   :  { %v220_v23 = vpop.f32.mrb[2].mxu0 }
  0xe0   :  { %v222_v24 = vpop.f32.mrb[3].mxu0  ;;  %1401 = vmatprep.mubr.f32.mxu1 %v424_v21  ;;  %v425_v10 = vadd.f32 %v1680_v19, %v220_v23 }
  0xe2   :  { %v1375_v29 = vpop.f32.mrb[0].mxu1 }
  0xe3   :  { %v338_v30 = vpop.f32.mrb[1].mxu1 }
  0xe4   :  { %v1376_v31 = vpop.f32.mrb[2].mxu1 }
  0xe5   :  { %v225_v25 = vpop.f32.mrb[4].mxu0  ;;  %v340_v32 = vpop.f32.mrb[3].mxu1 }
  0xe6   :  { %v227_v26 = vpop.f32.mrb[5].mxu0  ;;  %v426_v14 = vadd.f32 %v1680_v19, %v225_v25 }
  0xe7   :  { %v1683_v27 = vpop.f32.mrb[6].mxu0 }
  0xe8   :  { %v230_v28 = vpop.f32.mrb[7].mxu0  ;;  %v427_v26 = vadd.f32 %v1680_v19, %v1683_v27 }
  0xea   :  { %v1379_v37 = vpop.f32.mrb[4].mxu1 }
  0xeb   :  { %v350_v38 = vpop.f32.mrb[5].mxu1 }
  0xec   :  { %v1380_v39 = vpop.f32.mrb[6].mxu1 }
  0xed   :  { %v1685_v33 = vpop.f32.mrb[8].mxu0  ;;  %v352_v40 = vpop.f32.mrb[7].mxu1 }
  0xee   :  { %v235_v34 = vpop.f32.mrb[9].mxu0  ;;  %v428_v25 = vadd.f32 %v1680_v19, %v1685_v33 }
  0xef   :  { %v1687_v35 = vpop.f32.mrb[10].mxu0 }
  0xf0   :  { %v238_v36 = vpop.f32.mrb[11].mxu0  ;;  %v429_v37 = vadd.f32 %v1680_v19, %v1687_v35 }
  0xf2   :  { %v1383_v46 = vpop.f32.mrb[8].mxu1 }
  0xf3   :  { %v362_v47 = vpop.f32.mrb[9].mxu1 }
  0xf4   :  { %v1384_v48 = vpop.f32.mrb[10].mxu1 }
  0xf5   :  { %v1689_v41 = vpop.f32.mrb[12].mxu0  ;;  %v364_v49 = vpop.f32.mrb[11].mxu1 }
  0xf6   :  { %v243_v42 = vpop.f32.mrb[13].mxu0  ;;  %v430_v27 = vadd.f32 %v1680_v19, %v1689_v41 }
  0xf7   :  { %v244_v43 = vpop.f32.mrb[14].mxu0 }
  0xf8   :  { %v1692_v44 = vadd.f32 %v1680_v19, %v244_v43  ;;  %v246_v45 = vpop.f32.mrb[15].mxu0 }
  0xfa   :  { %v1387_v55 = vpop.f32.mrb[12].mxu1 }
  0xfb   :  { %v374_v58 = vpop.f32.mrb[13].mxu1 }
  0xfc   :  { %v1388_v59 = vpop.f32.mrb[14].mxu1 }
  0xfd   :  { %v249_v50 = vpop.f32.mrb[16].mxu0  ;;  %v376_v61 = vpop.f32.mrb[15].mxu1 }
  0xfe   :  { %v250_v51 = vpop.f32.mrb[17].mxu0 }
  0xff   :  { %v252_v53 = vpop.f32.mrb[18].mxu0  ;;  %v439_v56 = vadd.f32 %v1274_v52, %v250_v51 }
 0x100   :  { %v253_v54 = vpop.f32.mrb[19].mxu0 }
 0x101   :  { %v440_v57 = vadd.f32 %v1274_v52, %v253_v54 }
 0x102   :  { %v1391_v3 = vpop.f32.mrb[16].mxu1 }
 0x103   :  { %v1453_v60 = vpack.c.bf16 %v440_v57, %v439_v56  ;;  %v456_v6 = vadd.f32 %v1391_v3, %v1700_v1  ;;  %v386_v7 = vpop.f32.mrb[17].mxu1 }
 0x104   :  { %v454_v8 = vadd.f32 %v1700_v1, %v386_v7  ;;  %v1392_v9 = vpop.f32.mrb[18].mxu1 }
 0x105   :  { %v257_v62 = vpop.f32.mrb[20].mxu0  ;;  %1454 = vmatprep.subr.bf16.mxu1 %v1453_v60  ;;  %v457_v12 = vadd.f32 %v1392_v9, %v1700_v1  ;;  %v389_v13 = vpop.f32.mrb[19].mxu1 }
 0x106   :  { %v258_v63 = vpop.f32.mrb[21].mxu0  ;;  %1456 = vmatpush3.bf16.xpose.msra.mxu1 %v1453_v60  ;;  %v455_v15 = vadd.f32 %v1700_v1, %v389_v13 }
 0x107   :  { %v260_v0 = vpop.f32.mrb[22].mxu0  ;;  %v441_v4 = vadd.f32 %v1274_v52, %v258_v63  ;;  %v1708_v17 = vpack.c.bf16 %v457_v12, %v456_v6 }
 0x108   :  { %v261_v2 = vpop.f32.mrb[23].mxu0  ;;  %v1469_v20 = vpack.c.bf16 %v455_v15, %v454_v8 }
 0x109   :  { %v442_v5 = vadd.f32 %v1274_v52, %v261_v2 }
 0x10a   :  { %v1395_v19 = vpop.f32.mrb[20].mxu1 }
 0x10b   :  { %v1457_v11 = vpack.c.bf16 %v442_v5, %v441_v4  ;;  %v460_v48 = vadd.f32 %v1395_v19, %v1700_v1  ;;  %v402_v49 = vpop.f32.mrb[21].mxu1 }
 0x10c   :  { %v458_v51 = vadd.f32 %v1700_v1, %v402_v49 }
 0x10d   :  { %v265_v16 = vpop.f32.mrb[24].mxu0  ;;  %1402 = vmatmul.mubr.f32.vlgmr.msra.gmra.mrb[24].mxu1 %v425_v10  ;;  %1458 = vmatprep.subr.bf16.mxu1 %v1457_v11 }
 0x10e   :  { %v266_v18 = vpop.f32.mrb[25].mxu0  ;;  %1460 = vmatpush3.bf16.xpose.msra.mxu1 %v1457_v11  ;;  %1408 = vmatprep.mubr.f32.mxu1 %v426_v14 }
 0x10f   :  { %v268_v21 = vpop.f32.mrb[26].mxu0  ;;  %v443_v23 = vadd.f32 %v1274_v52, %v266_v18 }
 0x110   :  { %v269_v22 = vpop.f32.mrb[27].mxu0 }
 0x111   :  { %v444_v24 = vadd.f32 %v1274_v52, %v269_v22 }
 0x113   :  { %v1461_v28 = vpack.c.bf16 %v444_v24, %v443_v23 }
 0x115   :  { %v273_v29 = vpop.f32.mrb[28].mxu0  ;;  %1409 = vmatmul.mubr.f32.vlgmr.msra.gmra.mrb[26].mxu1 %v427_v26  ;;  %1462 = vmatprep.subr.bf16.mxu1 %v1461_v28 }
 0x116   :  { %v274_v30 = vpop.f32.mrb[29].mxu0  ;;  %1464 = vmatpush3.bf16.xpose.msra.mxu1 %v1461_v28  ;;  %1415 = vmatprep.mubr.f32.mxu1 %v428_v25 }
 0x117   :  { %v276_v31 = vpop.f32.mrb[30].mxu0  ;;  %v445_v34 = vadd.f32 %v1274_v52, %v274_v30 }
 0x118   :  { %v277_v32 = vpop.f32.mrb[31].mxu0 }
 0x119   :  { %v446_v36 = vadd.f32 %v1274_v52, %v277_v32  ;;  %v1396_v52 = vpop.f32.mrb[22].mxu1 }
 0x11a   :  { %v405_v54 = vpop.f32.mrb[23].mxu1 }
 0x11b   :  { %v1465_v38 = vpack.c.bf16 %v446_v36, %v445_v34  ;;  %v459_v55 = vadd.f32 %v1700_v1, %v405_v54 }
 0x11d   :  { %1416 = vmatmul.mubr.f32.vlgmr.msra.gmra.mrb[28].mxu1 %v429_v37  ;;  %1466 = vmatprep.subr.bf16.mxu1 %v1465_v38  ;;  %v281_v33 = vpop.f32.mrb[32].mxu0  ;;  %v1726_v57 = vpack.c.bf16 %v459_v55, %v458_v51 }
 0x11e   :  { %1468 = vmatpush3.bf16.xpose.msra.mxu1 %v1465_v38  ;;  %1422 = vmatprep.mubr.f32.mxu1 %v430_v27  ;;  %v282_v39 = vpop.f32.mrb[33].mxu0 }
 0x11f   :  { %1470 = vmatprep.subr.bf16.mxu1 %v1469_v20  ;;  %v283_v40 = vpop.f32.mrb[34].mxu0 }
 0x120   :  { %v284_v42 = vpop.f32.mrb[35].mxu0 }
 0x125   :  { %1423 = vmatmul.mubr.f32.vlgmr.msra.gmra.mrb[30].mxu1 %v1692_v44  ;;  %v287_v43 = vpop.f32.mrb[36].mxu0  ;;  %v461_v44 = vadd.f32 %v1396_v52, %v1700_v1 }
 0x126   :  { %1472 = vmatpush3.bf16.msra.mxu1 %v1469_v20  ;;  %v288_v45 = vpop.f32.mrb[37].mxu0 }
 0x127   :  { %1474 = vmatprep.subr.bf16.mxu1 %v1708_v17  ;;  %v289_v35 = vpop.f32.mrb[38].mxu0  ;;  %v1724_v56 = vpack.c.bf16 %v461_v44, %v460_v48 }
 0x128   :  { %v290_v46 = vpop.f32.mrb[39].mxu0 }
 0x12d   :  { %v293_v47 = vpop.f32.mrb[40].mxu0 }
 0x12e   :  { %v294_v41 = vpop.f32.mrb[41].mxu0 }
 0x12f   :  { %v295_v50 = vpop.f32.mrb[42].mxu0 }
 0x130   :  { %v296_v53 = vpop.f32.mrb[43].mxu0 }
 0x135   :  { %v299_v58 = vpop.f32.mrb[44].mxu0 }
 0x136   :  { %v300_v59 = vpop.f32.mrb[45].mxu0 }
 0x137   :  { %v301_v60 = vpop.f32.mrb[46].mxu0 }
 0x138   :  { %v302_v61 = vpop.f32.mrb[47].mxu0 }
 0x1e0   :  { %v1403_v62 = vpop.f32.mrb[24].mxu1 }
 0x1e1   :  { %v528_v63 = vpop.f32.mrb[25].mxu1  ;;  %v766_v2 = vsel %vm762_vm1, %v1403_v62, -inf }
 0x1e2   :  { %v763_v0 = vsel %vm762_vm1, %v528_v63, -inf }
 0x1e3   :  { %764 = vmax.xlane.f32.xlu0 %v763_v0 }
 0x1e7   :  { %767 = vmax.xlane.f32.xlu0 %v766_v2 }
 0x1e8   :  { %v1410_v3 = vpop.f32.mrb[26].mxu1 }
 0x1e9   :  { %v603_v4 = vpop.f32.mrb[27].mxu1  ;;  %v772_v5 = vsel %vm762_vm1, %v1410_v3, -inf }
 0x1ea   :  { %v769_v1 = vsel %vm762_vm1, %v603_v4, -inf }
 0x1eb   :  { %770 = vmax.xlane.f32.xlu1 %v769_v1 }
 0x1ef   :  { %773 = vmax.xlane.f32.xlu1 %v772_v5 }
 0x1f0   :  { %v1417_v6 = vpop.f32.mrb[28].mxu1 }
 0x1f1   :  { %v678_v7 = vpop.f32.mrb[29].mxu1  ;;  %v778_v8 = vsel %vm762_vm1, %v1417_v6, -inf }
 0x1f2   :  { %v775_v9 = vsel %vm762_vm1, %v678_v7, -inf }
 0x1f3   :  { %779 = vmax.xlane.f32.xlu1 %v778_v8  ;;  %776 = vmax.xlane.f32.xlu0 %v775_v9 }
 0x1f8   :  { %v1424_v10 = vpop.f32.mrb[30].mxu1 }
 0x1f9   :  { %v753_v11 = vpop.f32.mrb[31].mxu1  ;;  %v784_v12 = vsel %vm762_vm1, %v1424_v10, -inf }
 0x1fa   :  { %785 = vmax.xlane.f32.xlu1 %v784_v12  ;;  %v781_v13 = vsel %vm762_vm1, %v753_v11, -inf }
 0x1fb   :  { %782 = vmax.xlane.f32.xlu0 %v781_v13 }
 0x270   :  { %v765_v14 = vpop.xlane.xlu0 %764 }
 0x271   :  { %v787_v15 = vsub.f32 %v528_v63, %v765_v14 }
 0x273   :  { %v795_v16 = vmul.f32 1.442695, %v787_v15 }
 0x274   :  { %v768_v18 = vpop.xlane.xlu0 %767 }
 0x275   :  { %1509 = vpow2.f32 %v795_v16  ;;  %v788_v20 = vsub.f32 %v1403_v62, %v768_v18 }
 0x277   :  { %v797_v21 = vmul.f32 1.442695, %v788_v20 }
 0x278   :  { %v771_v22 = vpop.xlane.xlu1 %770 }
 0x279   :  { %1511 = vpow2.f32 %v797_v21  ;;  %v789_v23 = vsub.f32 %v603_v4, %v771_v22 }
 0x27b   :  { %v799_v24 = vmul.f32 1.442695, %v789_v23 }
 0x27c   :  { %v774_v26 = vpop.xlane.xlu1 %773 }
 0x27d   :  { %1513 = vpow2.f32 %v799_v24  ;;  %v790_v28 = vsub.f32 %v1410_v3, %v774_v26 }
 0x27f   :  { %v1510_v25 = vpop.eup %1509  ;;  %v801_v29 = vmul.f32 1.442695, %v790_v28 }
 0x280   :  { %v780_v30 = vpop.xlane.xlu1 %779  ;;  %v777_v31 = vpop.xlane.xlu0 %776  ;;  %v811_v32 = vsel %vm762_vm1, %v1510_v25, 0.0 }
 0x281   :  { %1515 = vpow2.f32 %v801_v29  ;;  %v792_v34 = vsub.f32 %v1417_v6, %v780_v30  ;;  %v791_v36 = vsub.f32 %v678_v7, %v777_v31  ;;  %812 = vadd.xlane.f32.xlu0 %v811_v32 }
 0x283   :  { %v1512_v37 = vpop.eup %1511  ;;  %v805_v38 = vmul.f32 1.442695, %v792_v34  ;;  %v803_v27 = vmul.f32 1.442695, %v791_v36 }
 0x284   :  { %v814_v33 = vsel %vm762_vm1, %v1512_v37, 0.0 }
 0x285   :  { %1517 = vpow2.f32 %v805_v38  ;;  %815 = vadd.xlane.f32.xlu1 %v814_v33 }
 0x286   :  { %1519 = vpow2.f32 %v803_v27 }
 0x287   :  { %v1514_v39 = vpop.eup %1513  ;;  %v786_v40 = vpop.xlane.xlu1 %785 }
 0x288   :  { %v794_v42 = vsub.f32 %v1424_v10, %v786_v40  ;;  %v783_v43 = vpop.xlane.xlu0 %782  ;;  %v817_v45 = vsel %vm762_vm1, %v1514_v39, 0.0 }
 0x289   :  { %v793_v35 = vsub.f32 %v753_v11, %v783_v43  ;;  %818 = vadd.xlane.f32.xlu0 %v817_v45 }
 0x28a   :  { %v809_v46 = vmul.f32 1.442695, %v794_v42 }
 0x28b   :  { %v1516_v47 = vpop.eup %1515  ;;  %v807_v19 = vmul.f32 1.442695, %v793_v35 }
 0x28c   :  { %1521 = vpow2.f32 %v809_v46  ;;  %v820_v41 = vsel %vm762_vm1, %v1516_v47, 0.0 }
 0x28d   :  { %1523 = vpow2.f32 %v807_v19  ;;  %821 = vadd.xlane.f32.xlu1 %v820_v41 }
 0x28f   :  { %v1518_v48 = vpop.eup %1517 }
 0x290   :  { %v1520_v49 = vpop.eup %1519  ;;  %v826_v50 = vsel %vm762_vm1, %v1518_v48, 0.0 }
 0x291   :  { %827 = vadd.xlane.f32.xlu1 %v826_v50  ;;  %v823_v51 = vsel %vm762_vm1, %v1520_v49, 0.0 }
 0x292   :  { %824 = vadd.xlane.f32.xlu0 %v823_v51 }
 0x296   :  { %v1522_v52 = vpop.eup %1521 }
 0x297   :  { %v1524_v53 = vpop.eup %1523  ;;  %v832_v44 = vsel %vm762_vm1, %v1522_v52, 0.0 }
 0x298   :  { %833 = vadd.xlane.f32.xlu1 %v832_v44  ;;  %v829_v54 = vsel %vm762_vm1, %v1524_v53, 0.0 }
 0x299   :  { %830 = vadd.xlane.f32.xlu0 %v829_v54 }
 0x30e   :  { %v813_v55 = vpop.xlane.xlu0 %812 }
 0x30f   :  { %1525 = vrcp.f32 %v813_v55 }
 0x312   :  { %v816_v58 = vpop.xlane.xlu1 %815 }
 0x313   :  { %1527 = vrcp.f32 %v816_v58 }
 0x316   :  { %v819_v59 = vpop.xlane.xlu0 %818 }
 0x317   :  { %1529 = vrcp.f32 %v819_v59 }
 0x319   :  { %v1526_v60 = vpop.eup %1525 }
 0x31a   :  { %v822_v61 = vpop.xlane.xlu1 %821  ;;  %v843_v62 = vmul.f32 %v1526_v60, %v1510_v25 }
 0x31b   :  { %1531 = vrcp.f32 %v822_v61 }
 0x31c   :  { %1429 = vmatprep.mubr.msk.f32.mxu1 %vm762_vm1, %v843_v62 }
 0x31d   :  { %v1528_v63 = vpop.eup %1527 }
 0x31e   :  { %v844_v0 = vmul.f32 %v1528_v63, %v1512_v37  ;;  %v828_v2 = vpop.xlane.xlu1 %827 }
 0x31f   :  { %1533 = vrcp.f32 %v828_v2  ;;  %v825_v3 = vpop.xlane.xlu0 %824 }
 0x320   :  { %1535 = vrcp.f32 %v825_v3  ;;  %1430 = vmatmul.mubr.msk.f32.vlgmr.msra.gmra.mrb[32].mxu1 %vm762_vm1, %v844_v0 }
 0x321   :  { %v1530_v4 = vpop.eup %1529  ;;  %1476 = vmatpush3.bf16.msra.mxu1 %v1708_v17 }
 0x322   :  { %1478 = vmatprep.subr.bf16.mxu1 %v1726_v57  ;;  %v845_v1 = vmul.f32 %v1530_v4, %v1514_v39 }
 0x324   :  { %1436 = vmatprep.mubr.msk.f32.mxu1 %vm762_vm1, %v845_v1 }
 0x325   :  { %v1532_v5 = vpop.eup %1531  ;;  %v834_v6 = vpop.xlane.xlu1 %833 }
 0x326   :  { %v846_v7 = vmul.f32 %v1532_v5, %v1516_v47  ;;  %1537 = vrcp.f32 %v834_v6  ;;  %v831_v8 = vpop.xlane.xlu0 %830 }
 0x327   :  { %1539 = vrcp.f32 %v831_v8 }
 0x328   :  { %1437 = vmatmul.mubr.msk.f32.vlgmr.msra.gmra.mrb[34].mxu1 %vm762_vm1, %v846_v7 }
 0x329   :  { %v1534_v9 = vpop.eup %1533  ;;  %1480 = vmatpush3.bf16.msra.mxu1 %v1726_v57 }
 0x32a   :  { %v1536_v10 = vpop.eup %1535  ;;  %v848_v11 = vmul.f32 %v1534_v9, %v1518_v48  ;;  %1482 = vmatprep.subr.bf16.mxu1 %v1724_v56 }
 0x32b   :  { %v847_v17 = vmul.f32 %v1536_v10, %v1520_v49 }
 0x32d   :  { %1443 = vmatprep.mubr.msk.f32.mxu1 %vm762_vm1, %v847_v17 }
 0x32e   :  { %1444 = vmatmul.mubr.msk.f32.vlgmr.msra.gmra.mrb[36].mxu1 %vm762_vm1, %v848_v11 }
 0x32f   :  { %1484 = vmatpush3.bf16.msra.mxu1 %v1724_v56 }
 0x330   :  { %v1538_v12 = vpop.eup %1537 }
 0x331   :  { %v1540_v13 = vpop.eup %1539  ;;  %v850_v15 = vmul.f32 %v1538_v12, %v1522_v52 }
 0x332   :  { %v849_v14 = vmul.f32 %v1540_v13, %v1524_v53 }
 0x334   :  { %1450 = vmatprep.mubr.msk.f32.mxu1 %vm762_vm1, %v849_v14 }
 0x335   :  { %1451 = vmatmul.mubr.msk.f32.vlgmr.msra.gmra.mrb[38].mxu1 %vm762_vm1, %v850_v15 }
 0x3f3   :  { %v1431_v57 = vpop.f32.mrb[32].mxu1 }
 0x3f4   :  { %v923_v16 = vpop.f32.mrb[33].mxu1 }
 0x3f5   :  { %v1303_v18 = vpack.c.bf16 %v1431_v57, %v923_v16 }
 0x3f7   :  { %1304 = vst [vmem:[#allocation2] sm:$0xff] %v1303_v18  }
 0x3fb   :  { %v1438_v20 = vpop.f32.mrb[34].mxu1 }
 0x3fc   :  { %v1004_v21 = vpop.f32.mrb[35].mxu1 }
 0x3fd   :  { %v1308_v22 = vpack.c.bf16 %v1438_v20, %v1004_v21 }
 0x3ff   :  { %1320 = vst [vmem:[#allocation2 + $0x8] sm:$0xff] %v1308_v22  }
 0x401   :  { %v1445_v23 = vpop.f32.mrb[36].mxu1 }
 0x402   :  { %v1085_v24 = vpop.f32.mrb[37].mxu1 }
 0x403   :  { %v1313_v26 = vpack.c.bf16 %v1445_v23, %v1085_v24 }
 0x405   :  { %1321 = vst [vmem:[#allocation2 + $0x10] sm:$0xff] %v1313_v26  }
 0x408   :  { %v1452_v56 = vpop.f32.mrb[38].mxu1 }
 0x409   :  { %v1166_v28 = vpop.f32.mrb[39].mxu1 }
 0x40a   :  { %v1318_v25 = vpack.c.bf16 %v1452_v56, %v1166_v28 }
 0x40c   :  { %1322 = vst [vmem:[#allocation2 + $0x18] sm:$0xff] %v1318_v25  }
 0x40d   :  { %1552 = shalt.err (!%p1549_p4)
}
 0x40e   :  { %s1553_s10 = scalar_lea.hbm %s1774_s5, 512 }
 0x40f   :  { %p1554_p5 = scmp.ne.s32.totalorder %s1774_s5, %s1553_s10  ;;  %p1557_p6 = scmp.lt.u32.totalorder %s1553_s10, %s1774_s5 }
 0x411   :  { %p1559_p7 = pnand %p1557_p6, %p1554_p5 }
 0x413   :  { %1562 = shalt.err (!%p1559_p7)
}
 0x414   :  { %s1567_s14 = smov 64   ;;  %s1568_s15 = smov 4  }
 0x415   :  { %1226 = dma.vmem_to_hbm [thread:$0]  %s1221_s6, 512, %s1774_s5, [#allocation3], %s1567_s14, %s1567_s14, %s1568_s15  }
 0x416   :  { %1563 = dma.done.wait [#allocation3], 512  }
 0x417   :  { %1564 = vsyncadd [#allocation3], 4294966784 }
 0x418   :  { %1230 = vsyncpa [#allocation3], 1 }

</bundles_post_ra>
